<compile_context>
chip_gen: v7x
topology: tpu7x:2x2x1
jax: 0.10.0
libtpu: 0.0.40
codegen_flags: <defaults>
</compile_context>

<pallas_src>
import functools

import jax
import jax.numpy as jnp
from jax.experimental import pallas as pl
from jax.experimental.pallas import tpu as pltpu


def _leaky_relu(x, slope=0.2):
    return jnp.where(x > 0, x, slope * x)


def student_kernel(x_ref, w1_ref, b1_ref, w2_ref, b2_ref, w3_ref, b3_ref, o_ref):
    # x and weights arrive as bf16; dots accumulate in f32 on the MXU.
    x = x_ref[...]

    h1 = jnp.dot(x, w1_ref[...], preferred_element_type=jnp.float32) + b1_ref[...]
    h1 = _leaky_relu(h1)

    h2 = jnp.dot(h1.astype(jnp.bfloat16), w2_ref[...],
                 preferred_element_type=jnp.float32) + b2_ref[...]
    h2 = _leaky_relu(h2)

    out = jnp.dot(h2.astype(jnp.bfloat16), w3_ref[...],
                  preferred_element_type=jnp.float32) + b3_ref[...]
    o_ref[...] = out.astype(o_ref.dtype)


@functools.partial(jax.jit, static_argnames=("tb",))
def student_forward(x, params, *, tb=256):
    """Run the Student MLP forward pass via a single fused Pallas TPU kernel."""
    w1, b1, w2, b2, w3, b3 = params
    B, input_dim = x.shape
    hidden = w1.shape[1]
    num_classes = w3.shape[1]

    # Lane-dense output: pad the final layer's output dim up to a multiple of 128.
    nc_pad = ((num_classes + 127) // 128) * 128

    # Batch tiling: adapt the tile to the (sublane-aligned) batch so tiny
    # batches are not padded to a full 256-row tile, then pad B to the tile.
    b_aligned = max(8, ((B + 7) // 8) * 8)
    tb = min(tb, b_aligned)
    grid_b = pl.cdiv(B, tb)
    bp = grid_b * tb

    x_bf = x.astype(jnp.bfloat16)
    if bp != B:
        x_bf = jnp.pad(x_bf, ((0, bp - B), (0, 0)))

    # bf16 weights (halves weight DMA + native MXU rate); f32 biases.
    w1b = w1.astype(jnp.bfloat16)
    w2b = w2.astype(jnp.bfloat16)
    w3b = jnp.pad(w3, ((0, 0), (0, nc_pad - num_classes))).astype(jnp.bfloat16)
    b1f = b1.astype(jnp.float32)
    b2f = b2.astype(jnp.float32)
    b3f = jnp.pad(b3, ((0, 0), (0, nc_pad - num_classes))).astype(jnp.float32)

    def resident(a):
        zeros = (0,) * a.ndim
        return pl.BlockSpec(a.shape, lambda i, _z=zeros: _z)

    flops = 2 * bp * (input_dim * hidden + hidden * hidden + hidden * nc_pad)
    bytes_accessed = (
        x_bf.size * 2
        + (w1b.size + w2b.size + w3b.size) * 2
        + (b1f.size + b2f.size + b3f.size) * 4
        + bp * nc_pad * 4
    )

    out = pl.pallas_call(
        student_kernel,
        out_shape=jax.ShapeDtypeStruct((bp, nc_pad), jnp.float32),
        grid=(grid_b,),
        in_specs=[
            pl.BlockSpec((tb, input_dim), lambda i: (i, 0)),  # x: tiled over batch
            resident(w1b), resident(b1f),                     # weights/biases: resident
            resident(w2b), resident(b2f),
            resident(w3b), resident(b3f),
        ],
        out_specs=pl.BlockSpec((tb, nc_pad), lambda i: (i, 0)),
        compiler_params=pltpu.CompilerParams(
            dimension_semantics=("parallel",),   # shard batch tiles across TCs (v7x)
            vmem_limit_bytes=8 * 1024 * 1024,    # footprint << 2 MiB; headroom on v7x
        ),
        cost_estimate=pl.CostEstimate(
            flops=flops, transcendentals=0, bytes_accessed=bytes_accessed),
    )(x_bf, w1b, b1f, w2b, b2f, w3b, b3f)

    return out[:B, :num_classes]


def init_student_params(key, input_dim, num_classes, hidden_dim):
    """Deterministic init mimicking PyTorch nn.Linear (uniform +/- 1/sqrt(fan_in)).

    Weights are stored (in_features, out_features) for the x @ W convention.
    """
    keys = jax.random.split(key, 6)

    def linear(kw, kb, fan_in, fan_out):
        bound = 1.0 / jnp.sqrt(fan_in)
        w = jax.random.uniform(kw, (fan_in, fan_out), jnp.float32, -bound, bound)
        b = jax.random.uniform(kb, (1, fan_out), jnp.float32, -bound, bound)
        return w, b

    w1, b1 = linear(keys[0], keys[1], input_dim, hidden_dim)
    w2, b2 = linear(keys[2], keys[3], hidden_dim, hidden_dim)
    w3, b3 = linear(keys[4], keys[5], hidden_dim, num_classes)
    return (w1, b1, w2, b2, w3, b3)


def student_reference_f32(x, params):
    """Pure f32 reference (matches the PyTorch module semantics)."""
    w1, b1, w2, b2, w3, b3 = params
    h = _leaky_relu(x @ w1 + b1)
    h = _leaky_relu(h @ w2 + b2)
    return h @ w3 + b3


def student_reference_bf16(x, params):
    """Reference that mirrors the kernel's bf16-operand / f32-accumulate math."""
    w1, b1, w2, b2, w3, b3 = params
    hi = jax.lax.Precision.HIGHEST
    bf = lambda a: a.astype(jnp.bfloat16).astype(jnp.float32)
    h = _leaky_relu(jnp.dot(bf(x), bf(w1), precision=hi) + b1)
    h = _leaky_relu(jnp.dot(bf(h), bf(w2), precision=hi) + b2)
    return jnp.dot(bf(h), bf(w3), precision=hi) + b3


if __name__ == "__main__":
    # Small shapes consistent with the module: batch=8 rows of input_dim=16
    # features, hidden_dim=256 (the module default), num_classes=4.
    batch, input_dim, hidden_dim, num_classes = 8, 16, 256, 4

    key = jax.random.PRNGKey(0)
    k_x, k_p = jax.random.split(key)
    x = jax.random.normal(k_x, (batch, input_dim), jnp.float32)
    params = init_student_params(k_p, input_dim, num_classes, hidden_dim)

    out = student_forward(x, params)
    out = jax.block_until_ready(out)
    assert out.shape == (batch, num_classes)

    # Tight check against a reference that uses the same bf16-rounded operands.
    ref_bf = student_reference_bf16(x, params)
    assert jnp.allclose(out, ref_bf, atol=1e-3, rtol=1e-3), (
        float(jnp.max(jnp.abs(out - ref_bf))))

    # Looser check against the full-f32 PyTorch-equivalent reference.
    ref_f32 = student_reference_f32(x, params)
    assert jnp.allclose(out, ref_f32, atol=5e-2, rtol=5e-2), (
        float(jnp.max(jnp.abs(out - ref_f32))))

    print("KERNEL_OK")
</pallas_src>

<mosaic_0001>
module attributes {stable_mosaic.version = 11 : i64} {
  func.func @student_kernel(%arg0: i32, %arg1: memref<8x16xbf16, #tpu.memory_space<vmem>>, %arg2: memref<16x256xbf16, #tpu.memory_space<vmem>>, %arg3: memref<1x256xf32, #tpu.memory_space<vmem>>, %arg4: memref<256x256xbf16, #tpu.memory_space<vmem>>, %arg5: memref<1x256xf32, #tpu.memory_space<vmem>>, %arg6: memref<256x128xbf16, #tpu.memory_space<vmem>>, %arg7: memref<1x128xf32, #tpu.memory_space<vmem>>, %arg8: memref<8x128xf32, #tpu.memory_space<vmem>>) attributes {dimension_semantics = [#tpu.dimension_semantics<parallel>], iteration_bounds = array<i64: 1>, scalar_prefetch = 0 : i64, scratch_operands = 0 : i64, tpu.core_type = #tpu.core_type<tc>, window_params = [{transform_indices = @transform_0, window_bounds = array<i64: 8, 16>}, {pipeline_mode = #tpu.pipeline_mode<synchronous>, transform_indices = @transform_1, window_bounds = array<i64: 16, 256>}, {pipeline_mode = #tpu.pipeline_mode<synchronous>, transform_indices = @transform_2, window_bounds = array<i64: 1, 256>}, {pipeline_mode = #tpu.pipeline_mode<synchronous>, transform_indices = @transform_3, window_bounds = array<i64: 256, 256>}, {pipeline_mode = #tpu.pipeline_mode<synchronous>, transform_indices = @transform_4, window_bounds = array<i64: 1, 256>}, {pipeline_mode = #tpu.pipeline_mode<synchronous>, transform_indices = @transform_5, window_bounds = array<i64: 256, 128>}, {pipeline_mode = #tpu.pipeline_mode<synchronous>, transform_indices = @transform_6, window_bounds = array<i64: 1, 128>}, {transform_indices = @transform_7, window_bounds = array<i64: 8, 128>}]} {
    %c0 = arith.constant 0 : index
    %c0_0 = arith.constant 0 : index
    %0 = vector.load %arg1[%c0, %c0_0] : memref<8x16xbf16, #tpu.memory_space<vmem>>, vector<8x16xbf16>
    %c0_1 = arith.constant 0 : index
    %c0_2 = arith.constant 0 : index
    %1 = vector.load %arg2[%c0_1, %c0_2] : memref<16x256xbf16, #tpu.memory_space<vmem>>, vector<16x256xbf16>
    %cst = arith.constant dense<0.000000e+00> : vector<8x256xf32>
    %2 = tpu.matmul %0, %1, %cst {dimension_numbers = #tpu.dot_dimension_numbers<[1], [0], [0], [1], [0, 0, 1, 1], [], []>} : vector<8x16xbf16>, vector<16x256xbf16>, vector<8x256xf32> -> vector<8x256xf32>
    %c0_3 = arith.constant 0 : index
    %c0_4 = arith.constant 0 : index
    %3 = vector.load %arg3[%c0_3, %c0_4] : memref<1x256xf32, #tpu.memory_space<vmem>>, vector<1x256xf32>
    %4 = vector.broadcast %3 : vector<1x256xf32> to vector<8x256xf32>
    %5 = arith.addf %2, %4 : vector<8x256xf32>
    %cst_5 = arith.constant 0.000000e+00 : f32
    %6 = vector.broadcast %cst_5 : f32 to vector<8x256xf32>
    %7 = arith.cmpf ogt, %5, %6 : vector<8x256xf32>
    %cst_6 = arith.constant 2.000000e-01 : f32
    %8 = vector.broadcast %cst_6 : f32 to vector<8x256xf32>
    %9 = arith.mulf %8, %5 : vector<8x256xf32>
    %10 = arith.select %7, %5, %9 : vector<8x256xi1>, vector<8x256xf32>
    %11 = arith.truncf %10 : vector<8x256xf32> to vector<8x256xbf16>
    %c0_7 = arith.constant 0 : index
    %c0_8 = arith.constant 0 : index
    %12 = vector.load %arg4[%c0_7, %c0_8] : memref<256x256xbf16, #tpu.memory_space<vmem>>, vector<256x256xbf16>
    %cst_9 = arith.constant dense<0.000000e+00> : vector<8x256xf32>
    %13 = tpu.matmul %11, %12, %cst_9 {dimension_numbers = #tpu.dot_dimension_numbers<[1], [0], [0], [1], [0, 0, 1, 1], [], []>} : vector<8x256xbf16>, vector<256x256xbf16>, vector<8x256xf32> -> vector<8x256xf32>
    %c0_10 = arith.constant 0 : index
    %c0_11 = arith.constant 0 : index
    %14 = vector.load %arg5[%c0_10, %c0_11] : memref<1x256xf32, #tpu.memory_space<vmem>>, vector<1x256xf32>
    %15 = vector.broadcast %14 : vector<1x256xf32> to vector<8x256xf32>
    %16 = arith.addf %13, %15 : vector<8x256xf32>
    %cst_12 = arith.constant 0.000000e+00 : f32
    %17 = vector.broadcast %cst_12 : f32 to vector<8x256xf32>
    %18 = arith.cmpf ogt, %16, %17 : vector<8x256xf32>
    %cst_13 = arith.constant 2.000000e-01 : f32
    %19 = vector.broadcast %cst_13 : f32 to vector<8x256xf32>
    %20 = arith.mulf %19, %16 : vector<8x256xf32>
    %21 = arith.select %18, %16, %20 : vector<8x256xi1>, vector<8x256xf32>
    %22 = arith.truncf %21 : vector<8x256xf32> to vector<8x256xbf16>
    %c0_14 = arith.constant 0 : index
    %c0_15 = arith.constant 0 : index
    %23 = vector.load %arg6[%c0_14, %c0_15] : memref<256x128xbf16, #tpu.memory_space<vmem>>, vector<256x128xbf16>
    %cst_16 = arith.constant dense<0.000000e+00> : vector<8x128xf32>
    %24 = tpu.matmul %22, %23, %cst_16 {dimension_numbers = #tpu.dot_dimension_numbers<[1], [0], [0], [1], [0, 0, 1, 1], [], []>} : vector<8x256xbf16>, vector<256x128xbf16>, vector<8x128xf32> -> vector<8x128xf32>
    %c0_17 = arith.constant 0 : index
    %c0_18 = arith.constant 0 : index
    %25 = vector.load %arg7[%c0_17, %c0_18] : memref<1x128xf32, #tpu.memory_space<vmem>>, vector<1x128xf32>
    %26 = vector.broadcast %25 : vector<1x128xf32> to vector<8x128xf32>
    %27 = arith.addf %24, %26 : vector<8x128xf32>
    %c0_19 = arith.constant 0 : index
    %c0_20 = arith.constant 0 : index
    %28 = vector.load %arg8[%c0_19, %c0_20] : memref<8x128xf32, #tpu.memory_space<vmem>>, vector<8x128xf32>
    tpu.vector_store %arg8[%c0_19, %c0_20], %27 {strides = array<i32>} : memref<8x128xf32, #tpu.memory_space<vmem>>, vector<8x128xf32>,
    return
  }
  func.func @transform_0(%arg0: i32) -> (i32, i32) {
    %c0_i32 = arith.constant 0 : i32
    %c0_i32_0 = arith.constant 0 : i32
    return %arg0, %c0_i32 : i32, i32
  }
  func.func @transform_1(%arg0: i32) -> (i32, i32) {
    %c0_i32 = arith.constant 0 : i32
    %c0_i32_0 = arith.constant 0 : i32
    %c0_i32_1 = arith.constant 0 : i32
    return %c0_i32, %c0_i32_0 : i32, i32
  }
  func.func @transform_2(%arg0: i32) -> (i32, i32) {
    %c0_i32 = arith.constant 0 : i32
    %c0_i32_0 = arith.constant 0 : i32
    %c0_i32_1 = arith.constant 0 : i32
    return %c0_i32, %c0_i32_0 : i32, i32
  }
  func.func @transform_3(%arg0: i32) -> (i32, i32) {
    %c0_i32 = arith.constant 0 : i32
    %c0_i32_0 = arith.constant 0 : i32
    %c0_i32_1 = arith.constant 0 : i32
    return %c0_i32, %c0_i32_0 : i32, i32
  }
  func.func @transform_4(%arg0: i32) -> (i32, i32) {
    %c0_i32 = arith.constant 0 : i32
    %c0_i32_0 = arith.constant 0 : i32
    %c0_i32_1 = arith.constant 0 : i32
    return %c0_i32, %c0_i32_0 : i32, i32
  }
  func.func @transform_5(%arg0: i32) -> (i32, i32) {
    %c0_i32 = arith.constant 0 : i32
    %c0_i32_0 = arith.constant 0 : i32
    %c0_i32_1 = arith.constant 0 : i32
    return %c0_i32, %c0_i32_0 : i32, i32
  }
  func.func @transform_6(%arg0: i32) -> (i32, i32) {
    %c0_i32 = arith.constant 0 : i32
    %c0_i32_0 = arith.constant 0 : i32
    %c0_i32_1 = arith.constant 0 : i32
    return %c0_i32, %c0_i32_0 : i32, i32
  }
  func.func @transform_7(%arg0: i32) -> (i32, i32) {
    %c0_i32 = arith.constant 0 : i32
    %c0_i32_0 = arith.constant 0 : i32
    return %arg0, %c0_i32 : i32, i32
  }
}

</mosaic_0001>

<bundles_post_ra>
// kernel: student_forward.1
= control target key start
LH: loop header
LB: loop body
LE: loop exit
PB: predicated region body
PF: predicated region fallthrough
CT: control target
= control target key end

     0   :  { %v680_v1 = vmov 0   ;;  %vm52_vm0 = vcmask 130048   ;;  %v32_v48 = vlaneseq  ;;  %s886_s1 = inlined_call_operand.vmem [shape: bf16[16,256], index: 1, kind: input, shape index: {}]   ;;  %s887_s0 = inlined_call_operand.vmem [shape: bf16[8,16], index: 0, kind: input, shape index: {}]   ;;  %s888_s3 = inlined_call_operand.vmem [shape: bf16[256,256], index: 3, kind: input, shape index: {}]   ;;  %s889_s5 = inlined_call_operand.vmem [shape: bf16[256,128], index: 5, kind: input, shape index: {}]   ;;  %s890_s2 = inlined_call_operand.vmem [shape: f32[1,256], index: 2, kind: input, shape index: {}]   ;;  %s891_s4 = inlined_call_operand.vmem [shape: f32[1,256], index: 4, kind: input, shape index: {}]   ;;  %s892_s6 = inlined_call_operand.vmem [shape: f32[1,128], index: 6, kind: input, shape index: {}]   ;;  %s893_s7 = inlined_call_operand.vmem [shape: f32[8,128], index: 7, kind: output, shape index: {}]  }
   0x1   :  { %v613_v0 = vld [vmem:[%s886_s1 + $0x4] ss:$8 sps:$4 sm:$0xff]   ;;  %88 = vmatprep.mubr.bf16.mxu0 %v680_v1  ;;  %v615_v2 = vld [vmem:[%s886_s1] ss:$8 sps:$4 sm:$0xff]   ;;  %v619_v6 = vld [vmem:[%s888_s3 + $0x14] ss:$8 sps:$4 sm:$0xff]  }
   0x2   :  { %v27_v3 = vld [vmem:[%s887_s0] sm:$0xf]  ;;  %56 = vmatprep.subr.bf16.mxu0 %v613_v0  ;;  %v616_v4 = vld [vmem:[%s888_s3 + $0x4] ss:$8 sps:$4 sm:$0xff]   ;;  %v621_v7 = vld [vmem:[%s888_s3 + $0x10] ss:$8 sps:$4 sm:$0xff]  }
   0x3   :  { %v618_v5 = vld [vmem:[%s888_s3] ss:$8 sps:$4 sm:$0xff]   ;;  %57 = vmatpush1.bf16.msra.mxu0 %v615_v2  ;;  %309 = vmatprep.subr.bf16.mxu1 %v616_v4  ;;  %v622_v8 = vld [vmem:[%s888_s3 + $0x24] ss:$8 sps:$4 sm:$0xff]   ;;  %v625_v10 = vld [vmem:[%s888_s3 + $0x34] ss:$8 sps:$4 sm:$0xff]  }
   0x4   :  { %310 = vmatpush1.bf16.msra.mxu1 %v618_v5  ;;  %v624_v9 = vld [vmem:[%s888_s3 + $0x20] ss:$8 sps:$4 sm:$0xff]   ;;  %v627_v11 = vld [vmem:[%s888_s3 + $0x30] ss:$8 sps:$4 sm:$0xff]   ;;  %v628_v12 = vld [vmem:[%s888_s3 + $0x44] ss:$8 sps:$4 sm:$0xff]  }
   0x5   :  { %311 = vmatprep.subr.bf16.mxu1 %v619_v6  ;;  %v630_v13 = vld [vmem:[%s888_s3 + $0x40] ss:$8 sps:$4 sm:$0xff]   ;;  %v631_v14 = vld [vmem:[%s888_s3 + $0x54] ss:$8 sps:$4 sm:$0xff]   ;;  %v633_v15 = vld [vmem:[%s888_s3 + $0x50] ss:$8 sps:$4 sm:$0xff]  }
   0x6   :  { %540 = vmatmul.mubr.msk.bf16.vlgmr.msra.gmra.mrb[0].mxu0 %vm52_vm0, %v27_v3  ;;  %v634_v16 = vld [vmem:[%s888_s3 + $0x64] ss:$8 sps:$4 sm:$0xff]   ;;  %v636_v17 = vld [vmem:[%s888_s3 + $0x60] ss:$8 sps:$4 sm:$0xff]   ;;  %v637_v18 = vld [vmem:[%s888_s3 + $0x74] ss:$8 sps:$4 sm:$0xff]  }
   0x7   :  { %v639_v19 = vld [vmem:[%s888_s3 + $0x70] ss:$8 sps:$4 sm:$0xff]   ;;  %v640_v20 = vld [vmem:[%s888_s3 + $0x84] ss:$8 sps:$4 sm:$0xff]   ;;  %v642_v21 = vld [vmem:[%s888_s3 + $0x80] ss:$8 sps:$4 sm:$0xff]  }
   0x8   :  { %312 = vmatpush1.bf16.msra.mxu1 %v621_v7  ;;  %v643_v22 = vld [vmem:[%s888_s3 + $0x94] ss:$8 sps:$4 sm:$0xff]   ;;  %v645_v23 = vld [vmem:[%s888_s3 + $0x90] ss:$8 sps:$4 sm:$0xff]   ;;  %v646_v24 = vld [vmem:[%s888_s3 + $0xa4] ss:$8 sps:$4 sm:$0xff]  }
   0x9   :  { %313 = vmatprep.subr.bf16.mxu1 %v622_v8  ;;  %v648_v25 = vld [vmem:[%s888_s3 + $0xa0] ss:$8 sps:$4 sm:$0xff]   ;;  %v649_v26 = vld [vmem:[%s888_s3 + $0xb4] ss:$8 sps:$4 sm:$0xff]   ;;  %v651_v27 = vld [vmem:[%s888_s3 + $0xb0] ss:$8 sps:$4 sm:$0xff]  }
   0xa   :  { %v652_v28 = vld [vmem:[%s888_s3 + $0xc4] ss:$8 sps:$4 sm:$0xff]   ;;  %v654_v29 = vld [vmem:[%s888_s3 + $0xc0] ss:$8 sps:$4 sm:$0xff]   ;;  %v655_v30 = vld [vmem:[%s888_s3 + $0xd4] ss:$8 sps:$4 sm:$0xff]  }
   0xb   :  { %v657_v31 = vld [vmem:[%s888_s3 + $0xd0] ss:$8 sps:$4 sm:$0xff]   ;;  %v658_v32 = vld [vmem:[%s888_s3 + $0xe4] ss:$8 sps:$4 sm:$0xff]   ;;  %v660_v33 = vld [vmem:[%s888_s3 + $0xe0] ss:$8 sps:$4 sm:$0xff]  }
   0xc   :  { %314 = vmatpush1.bf16.msra.mxu1 %v624_v9  ;;  %v661_v34 = vld [vmem:[%s888_s3 + $0xf4] ss:$8 sps:$4 sm:$0xff]   ;;  %v663_v35 = vld [vmem:[%s888_s3 + $0xf0] ss:$8 sps:$4 sm:$0xff]   ;;  %v664_v36 = vld [vmem:[%s889_s5 + $0x40] sm:$0xff]   ;;  %v33_v49 = vshrl.u32 %v32_v48, 7 }
   0xd   :  { %315 = vmatprep.subr.bf16.mxu1 %v625_v10  ;;  %v665_v37 = vld [vmem:[%s889_s5] sm:$0xff]   ;;  %590 = vmatprep.subr.bf16.mxu0 %v664_v36  ;;  %v666_v38 = vld [vmem:[%s889_s5 + $0x48] sm:$0xff]   ;;  %v668_v40 = vld [vmem:[%s889_s5 + $0x50] sm:$0xff]  }
   0xe   :  { %591 = vmatpush3.bf16.msra.mxu0 %v665_v37  ;;  %v667_v39 = vld [vmem:[%s889_s5 + $0x8] sm:$0xff]   ;;  %v669_v41 = vld [vmem:[%s889_s5 + $0x10] sm:$0xff]   ;;  %v670_v42 = vld [vmem:[%s889_s5 + $0x58] sm:$0xff]   ;;  %v34_v50 = vsub.s32 0, %v33_v49  ;;  %v38_v52 = vsub.s32 1, %v33_v49 }
   0xf   :  { %592 = vmatprep.subr.bf16.mxu0 %v666_v38  ;;  %v671_v43 = vld [vmem:[%s889_s5 + $0x18] sm:$0xff]   ;;  %v672_v44 = vld [vmem:[%s889_s5 + $0x60] sm:$0xff]   ;;  %v674_v46 = vld [vmem:[%s889_s5 + $0x68] sm:$0xff]  }
  0x10   :  { %316 = vmatpush1.bf16.msra.mxu1 %v627_v11  ;;  %v673_v45 = vld [vmem:[%s889_s5 + $0x20] sm:$0xff]   ;;  %v675_v47 = vld [vmem:[%s889_s5 + $0x28] sm:$0xff]   ;;  %v676_v3 = vld [vmem:[%s889_s5 + $0x70] sm:$0xff]  }
  0x11   :  { %317 = vmatprep.subr.bf16.mxu1 %v628_v12  ;;  %v30_v51 = vld [vmem:[%s890_s2] sm:$0x3]  ;;  %v677_v4 = vld [vmem:[%s889_s5 + $0x30] sm:$0xff]   ;;  %v678_v5 = vld [vmem:[%s889_s5 + $0x78] sm:$0xff]  }
  0x12   :  { %593 = vmatpush3.bf16.msra.mxu0 %v667_v39  ;;  %v35_v53 = vrot.slane %v30_v51, %v34_v50  ;;  %v39_v54 = vrot.slane %v30_v51, %v38_v52  ;;  %v679_v6 = vld [vmem:[%s889_s5 + $0x38] sm:$0xff]   ;;  %v137_v7 = vld [vmem:[%s891_s4] sm:$0x3] }
  0x13   :  { %594 = vmatprep.subr.bf16.mxu0 %v668_v40  ;;  %v142_v8 = vrot.slane %v137_v7, %v34_v50  ;;  %v146_v9 = vrot.slane %v137_v7, %v38_v52 }
  0x14   :  { %318 = vmatpush1.bf16.msra.mxu1 %v630_v13 }
  0x15   :  { %319 = vmatprep.subr.bf16.mxu1 %v631_v14 }
  0x16   :  { %595 = vmatpush3.bf16.msra.mxu0 %v669_v41 }
  0x17   :  { %596 = vmatprep.subr.bf16.mxu0 %v670_v42 }
  0x18   :  { %320 = vmatpush1.bf16.msra.mxu1 %v633_v15 }
  0x19   :  { %321 = vmatprep.subr.bf16.mxu1 %v634_v16 }
  0x1a   :  { %597 = vmatpush3.bf16.msra.mxu0 %v671_v43 }
  0x1b   :  { %598 = vmatprep.subr.bf16.mxu0 %v672_v44 }
  0x1c   :  { %322 = vmatpush1.bf16.msra.mxu1 %v636_v17 }
  0x1d   :  { %323 = vmatprep.subr.bf16.mxu1 %v637_v18 }
  0x1e   :  { %599 = vmatpush3.bf16.msra.mxu0 %v673_v45 }
  0x1f   :  { %600 = vmatprep.subr.bf16.mxu0 %v674_v46 }
  0x20   :  { %324 = vmatpush1.bf16.msra.mxu1 %v639_v19 }
  0x21   :  { %325 = vmatprep.subr.bf16.mxu1 %v640_v20 }
  0x22   :  { %601 = vmatpush3.bf16.msra.mxu0 %v675_v47 }
  0x23   :  { %602 = vmatprep.subr.bf16.mxu0 %v676_v3 }
  0x24   :  { %326 = vmatpush1.bf16.msra.mxu1 %v642_v21 }
  0x25   :  { %327 = vmatprep.subr.bf16.mxu1 %v643_v22 }
  0x26   :  { %603 = vmatpush3.bf16.msra.mxu0 %v677_v4 }
  0x27   :  { %604 = vmatprep.subr.bf16.mxu0 %v678_v5 }
  0x28   :  { %328 = vmatpush1.bf16.msra.mxu1 %v645_v23  ;;  %v573_v23 = vld [vmem:[%s892_s6] ss:$0 sm:$0xff] }
  0x29   :  { %329 = vmatprep.subr.bf16.mxu1 %v646_v24 }
  0x2a   :  { %605 = vmatpush3.bf16.msra.mxu0 %v679_v6 }
  0x2c   :  { %330 = vmatpush1.bf16.msra.mxu1 %v648_v25 }
  0x2d   :  { %331 = vmatprep.subr.bf16.mxu1 %v649_v26 }
  0x30   :  { %332 = vmatpush1.bf16.msra.mxu1 %v651_v27 }
  0x31   :  { %333 = vmatprep.subr.bf16.mxu1 %v652_v28 }
  0x34   :  { %334 = vmatpush1.bf16.msra.mxu1 %v654_v29 }
  0x35   :  { %335 = vmatprep.subr.bf16.mxu1 %v655_v30 }
  0x38   :  { %336 = vmatpush1.bf16.msra.mxu1 %v657_v31 }
  0x39   :  { %337 = vmatprep.subr.bf16.mxu1 %v658_v32 }
  0x3c   :  { %338 = vmatpush1.bf16.msra.mxu1 %v660_v33 }
  0x3d   :  { %339 = vmatprep.subr.bf16.mxu1 %v661_v34 }
  0x40   :  { %340 = vmatpush1.bf16.msra.mxu1 %v663_v35 }
  0xd9   :  { %v90_v55 = vpop.f32.mrb[0].mxu0 }
  0xda   :  { %v91_v56 = vadd.f32 %v90_v55, %v35_v53  ;;  %v92_v57 = vpop.f32.mrb[1].mxu0 }
  0xdb   :  { %v93_v58 = vadd.f32 %v92_v57, %v39_v54  ;;  %v94_v59 = vpop.f32.mrb[2].mxu0 }
  0xdc   :  { %vm97_vm1 = vcmp.gt.f32.partialorder %v91_v56, 0.0  ;;  %v99_v60 = vmul.f32 0.2, %v91_v56  ;;  %v95_v61 = vpop.f32.mrb[3].mxu0 }
  0xdd   :  { %vm98_vm2 = vcmp.gt.f32.partialorder %v93_v58, 0.0  ;;  %v100_v62 = vmul.f32 0.2, %v93_v58 }
  0xde   :  { %v101_v63 = vsel %vm97_vm1, %v91_v56, %v99_v60 }
  0xdf   :  { %v102_v0 = vsel %vm98_vm2, %v93_v58, %v100_v62  ;;  %v103_v2 = vpack.c.bf16 %v101_v63, %v101_v63 }
  0xe0   :  { %v104_v1 = vpack.c.bf16 %v102_v0, %v102_v0 }
  0xe2   :  { %341 = vmatprep.mubr.bf16.mxu1 %v104_v1 }
  0xe3   :  { %342 = vmatmul.mubr.bf16.vlgmr.msra.gmra.mrb[0].mxu1 %v103_v2 }
 0x1b6   :  { %v343_v10 = vpop.f32.mrb[0].mxu1 }
 0x1b7   :  { %v344_v11 = vadd.f32 %v343_v10, %v142_v8  ;;  %v345_v12 = vpop.f32.mrb[1].mxu1 }
 0x1b8   :  { %v346_v13 = vadd.f32 %v345_v12, %v146_v9  ;;  %v347_v14 = vpop.f32.mrb[2].mxu1 }
 0x1b9   :  { %vm350_vm3 = vcmp.gt.f32.partialorder %v344_v11, 0.0  ;;  %v352_v15 = vmul.f32 0.2, %v344_v11  ;;  %v348_v16 = vpop.f32.mrb[3].mxu1 }
 0x1ba   :  { %vm351_vm4 = vcmp.gt.f32.partialorder %v346_v13, 0.0  ;;  %v353_v17 = vmul.f32 0.2, %v346_v13 }
 0x1bb   :  { %v354_v18 = vsel %vm350_vm3, %v344_v11, %v352_v15 }
 0x1bc   :  { %v355_v19 = vsel %vm351_vm4, %v346_v13, %v353_v17  ;;  %v356_v21 = vpack.c.bf16 %v354_v18, %v354_v18 }
 0x1bd   :  { %v357_v20 = vpack.c.bf16 %v355_v19, %v355_v19 }
 0x1bf   :  { %525 = vmatprep.mubr.bf16.mxu0 %v357_v20 }
 0x1c0   :  { %526 = vmatmul.mubr.bf16.vlgmr.msra.gmra.mrb[4].mxu0 %v356_v21 }
 0x293   :  { %v606_v22 = vpop.f32.mrb[4].mxu0 }
 0x294   :  { %v607_v24 = vpop.f32.mrb[5].mxu0 }
 0x295   :  { %v608_v25 = vadd.f32 %v607_v24, %v606_v22  ;;  %v609_v26 = vpop.f32.mrb[6].mxu0 }
 0x296   :  { %v610_v27 = vpop.f32.mrb[7].mxu0 }
 0x297   :  { %v528_v28 = vadd.f32 %v608_v25, %v573_v23 }
 0x299   :  { %533 = vst [vmem:[%s893_s7] sm:$0xff] %v528_v28 }

</bundles_post_ra>
